<compile_context>
chip_gen: v6e
topology: v6e:2x2x1
jax: 0.10.0
libtpu: 0.0.40
codegen_flags: <defaults>
</compile_context>

<pallas_src>
import random

import jax
import jax.numpy as jnp
import numpy as np
from jax.experimental import pallas as pl
from jax.experimental.pallas import tpu as pltpu


def _round_up(x: int, m: int) -> int:
    return ((x + m - 1) // m) * m


def mean_agg_kernel(mask_ref, emb_ref, inv_deg_ref, out_ref):
    # mask_ref   : [tm, tu] bf16 0/1 adjacency tile (rows = target nodes)
    # emb_ref    : [tu, td] bf16 unique-neighbor embedding tile
    # inv_deg_ref: [tm, 1]  f32 exact 1 / max(num_neigh, 1), host-precomputed
    # out_ref    : [tm, td] f32 output tile; doubles as the reduction
    #              accumulator (same (i, j) block across the k axis)
    k = pl.program_id(2)

    @pl.when(k == 0)
    def _():
        out_ref[...] = jnp.zeros_like(out_ref)

    out_ref[...] += jnp.dot(
        mask_ref[...], emb_ref[...], preferred_element_type=jnp.float32
    )

    @pl.when(k == pl.num_programs(2) - 1)
    def _():
        # Epilogue normalization: scale N*D values instead of N*U mask entries.
        out_ref[...] *= inv_deg_ref[...]


def _tile_config():
    """Pick tile caps and scoped-VMEM limit per chip generation.

    v5e / v6e have 128 MiB VMEM -> large M tiles + raised limit (v5e's 16 MiB
    default scoped limit is otherwise exceeded; v6e is DMA-bound at small tm).
    v7x has 64 MiB VMEM -> cap tm at 1024 and keep headroom.
    """
    vmem_cap = 64 * 1024 * 1024  # conservative fallback (assume v7x-sized VMEM)
    try:
        vmem_cap = int(pltpu.get_tpu_info().vmem_capacity_bytes)
    except Exception:
        pass
    if vmem_cap >= 96 * 1024 * 1024:      # v5e / v6e
        return dict(tm_max=2048, tu_max=2048, td_max=1024,
                    vmem_limit=100 * 1024 * 1024)
    return dict(tm_max=1024, tu_max=2048, td_max=1024,   # v7x
                vmem_limit=48 * 1024 * 1024)


def mean_aggregate(mask, embed_matrix, degrees) -> jax.Array:
    """to_feats = (mask / deg) @ embed_matrix, tiled on TPU.

    mask:         [N, U] {0,1} entries (any dtype; uint8 preferred from host)
    embed_matrix: [U, D] float
    degrees:      [N]    float (row sums of mask, i.e. len(samp_neigh))
    returns       [N, D] float32
    """
    n, u = mask.shape
    u2, d = embed_matrix.shape
    assert u == u2
    cfg = _tile_config()

    # Tile sizes: sublane-multiple rows (bf16 packs 16 rows/vreg), 128-lane
    # multiples on the U / D axes so all stores are full-lane (no vst.msk).
    tm = min(cfg["tm_max"], _round_up(n, 16))
    tu = min(cfg["tu_max"], _round_up(u, 128))
    td = min(cfg["td_max"], _round_up(d, 128))
    n_pad = _round_up(n, tm)
    u_pad = _round_up(u, tu)
    d_pad = _round_up(d, td)

    # Pad + cast in one fused device op per operand.  The mask arrives narrow
    # (uint8 -> 1 B/elem H2D instead of 4 B for f32); {0,1} is exact in bf16.
    # Embedding bf16 cast is lossy (~1e-2 rel vs PyTorch f32) but MXU-friendly.
    mask_p = jnp.zeros((n_pad, u_pad), jnp.bfloat16).at[:n, :u].set(
        jnp.asarray(mask).astype(jnp.bfloat16))
    emb_p = jnp.zeros((u_pad, d_pad), jnp.bfloat16).at[:u, :d].set(
        jnp.asarray(embed_matrix).astype(jnp.bfloat16))
    # Exact reciprocal degree from the host side; padded rows get 1.0 (their
    # mask rows are all-zero -> output 0).  Zero-neighbor rows: clamp to 1
    # (PyTorch would give NaN from 0/0 — intentional difference).
    inv_deg_p = jnp.ones((n_pad, 1), jnp.float32).at[:n, 0].set(
        1.0 / jnp.maximum(jnp.asarray(degrees, jnp.float32), 1.0))

    grid = (n_pad // tm, d_pad // td, u_pad // tu)

    out = pl.pallas_call(
        mean_agg_kernel,
        out_shape=jax.ShapeDtypeStruct((n_pad, d_pad), jnp.float32),
        grid_spec=pltpu.PrefetchScalarGridSpec(
            num_scalar_prefetch=0,
            grid=grid,
            in_specs=[
                pl.BlockSpec((tm, tu), lambda i, j, k: (i, k)),   # mask
                pl.BlockSpec((tu, td), lambda i, j, k: (k, j)),   # embeddings
                pl.BlockSpec((tm, 1), lambda i, j, k: (i, 0)),    # 1/deg
            ],
            out_specs=pl.BlockSpec((tm, td), lambda i, j, k: (i, j)),
        ),
        compiler_params=pltpu.CompilerParams(
            dimension_semantics=("parallel", "parallel", "arbitrary"),
            vmem_limit_bytes=cfg["vmem_limit"],
        ),
        cost_estimate=pl.CostEstimate(
            flops=2 * n_pad * u_pad * d_pad,
            transcendentals=0,
            bytes_accessed=(n_pad * u_pad * 2 + u_pad * d_pad * 2
                            + n_pad * 4 + n_pad * d_pad * 4),
        ),
    )(mask_p, emb_p, inv_deg_p)

    return out[:n, :d]


def build_mask_and_unique(nodes, to_neighs, num_sample=10, gcn=False):
    """Host-side glue: reproduces the set / sampling / indexing logic of
    MeanAggregator.forward (no tensor compute here).  Mask is built as uint8
    to keep host->device traffic at 1 byte/element."""
    _set = set
    if num_sample is not None:
        _sample = random.sample
        samp_neighs = [
            _set(_sample(sorted(to_neigh), num_sample))
            if len(to_neigh) >= num_sample
            else to_neigh
            for to_neigh in to_neighs
        ]
    else:
        samp_neighs = to_neighs
    if gcn:
        samp_neighs = [
            set.union(samp_neigh, _set([nodes[i]]))
            for i, samp_neigh in enumerate(samp_neighs)
        ]
    unique_nodes_list = list(set.union(*samp_neighs))
    unique_nodes = {n: i for i, n in enumerate(unique_nodes_list)}
    mask = np.zeros((len(samp_neighs), len(unique_nodes)), dtype=np.uint8)
    column_indices = [
        unique_nodes[n] for samp_neigh in samp_neighs for n in samp_neigh
    ]
    row_indices = [
        i for i in range(len(samp_neighs)) for _ in range(len(samp_neighs[i]))
    ]
    mask[row_indices, column_indices] = 1
    degrees = np.array([len(s) for s in samp_neighs], dtype=np.float32)
    return mask, unique_nodes_list, degrees


def mean_aggregator_forward(features_table, mask_np, unique_nodes_list,
                            degrees_np):
    """Embedding gather (features(unique_nodes)) + Pallas mean aggregation."""
    idx = jnp.asarray(np.asarray(unique_nodes_list, dtype=np.int32))
    embed_matrix = jnp.take(features_table, idx, axis=0)
    return mean_aggregate(mask_np, embed_matrix, degrees_np), embed_matrix


if __name__ == "__main__":
    # Deterministic setup.
    random.seed(0)
    key = jax.random.PRNGKey(0)

    num_embeddings = 50   # size of the synthetic embedding table (self.features)
    embed_dim = 32        # feature dimension
    num_nodes = 8         # number of target nodes in this batch
    num_sample = 10

    # Deterministic embedding table (stands in for nn.Embedding weights).
    features_table = jax.random.normal(
        key, (num_embeddings, embed_dim), dtype=jnp.float32
    )

    # Deterministic neighbor lists (graph adjacency), each node gets 5..14 nbrs.
    nodes = list(range(num_nodes))
    to_neighs = []
    for i in range(num_nodes):
        n_nb = 5 + (i % 10)
        to_neighs.append(set(random.sample(range(num_embeddings), n_nb)))

    # Build the sampled mask ONCE and reuse it for both the kernel and the
    # references (so the self-check compares against the same neighbor sample).
    mask_np, unique_nodes_list, degrees_np = build_mask_and_unique(
        nodes, to_neighs, num_sample=num_sample, gcn=False
    )

    out, embed_matrix = mean_aggregator_forward(
        features_table, mask_np, unique_nodes_list, degrees_np
    )
    out = jax.block_until_ready(out)

    # Reference 1 (dtype-matched): same bf16 mask/emb, f32 accumulate,
    # exact divide by degree (kernel multiplies by exact host 1/deg).
    mask_b = jnp.asarray(mask_np).astype(jnp.bfloat16)
    emb_b = embed_matrix.astype(jnp.bfloat16)
    deg = jnp.maximum(jnp.asarray(degrees_np, jnp.float32), 1.0)[:, None]
    ref_bf16 = jnp.dot(mask_b, emb_b, preferred_element_type=jnp.float32) / deg
    np.testing.assert_allclose(
        np.asarray(out), np.asarray(ref_bf16), rtol=2e-3, atol=2e-3
    )

    # Reference 2 (loose, full f32 — exactly the PyTorch math).
    emb_np = np.asarray(embed_matrix)
    mask_f32 = mask_np.astype(np.float32)
    ref_f32 = (mask_f32 / np.maximum(mask_f32.sum(1, keepdims=True), 1.0)) @ emb_np
    np.testing.assert_allclose(np.asarray(out), ref_f32, rtol=5e-2, atol=5e-2)

    print("KERNEL_OK")
</pallas_src>

<mosaic_0001>
module attributes {stable_mosaic.version = 11 : i64} {
  func.func @mean_agg_kernel(%arg0: i32, %arg1: i32, %arg2: i32, %arg3: memref<16x128xbf16, #tpu.memory_space<vmem>>, %arg4: memref<128x128xbf16, #tpu.memory_space<vmem>>, %arg5: memref<16x1xf32, #tpu.memory_space<vmem>>, %arg6: memref<16x128xf32, #tpu.memory_space<vmem>>) attributes {dimension_semantics = [#tpu.dimension_semantics<parallel>, #tpu.dimension_semantics<parallel>, #tpu.dimension_semantics<arbitrary>], iteration_bounds = array<i64: 1, 1, 1>, scalar_prefetch = 0 : i64, scratch_operands = 0 : i64, tpu.core_type = #tpu.core_type<tc>, window_params = [{transform_indices = @transform_0, window_bounds = array<i64: 16, 128>}, {transform_indices = @transform_1, window_bounds = array<i64: 128, 128>}, {transform_indices = @transform_2, window_bounds = array<i64: 16, 1>}, {transform_indices = @transform_3, window_bounds = array<i64: 16, 128>}]} {
    %c0_i32 = arith.constant 0 : i32
    %0 = arith.cmpi eq, %arg2, %c0_i32 : i32
    %1 = arith.extui %0 : i1 to i32
    %c0_i32_0 = arith.constant 0 : i32
    %2 = arith.cmpi ne, %1, %c0_i32_0 : i32
    scf.if %2 {
      %cst_10 = arith.constant 0.000000e+00 : f32
      %12 = vector.broadcast %cst_10 : f32 to vector<16x128xf32>
      %c0_11 = arith.constant 0 : index
      %c0_12 = arith.constant 0 : index
      %13 = vector.load %arg6[%c0_11, %c0_12] : memref<16x128xf32, #tpu.memory_space<vmem>>, vector<16x128xf32>
      tpu.vector_store %arg6[%c0_11, %c0_12], %12 {strides = array<i32>} : memref<16x128xf32, #tpu.memory_space<vmem>>, vector<16x128xf32>,
    } else {
    }
    %c0 = arith.constant 0 : index
    %c0_1 = arith.constant 0 : index
    %3 = vector.load %arg6[%c0, %c0_1] : memref<16x128xf32, #tpu.memory_space<vmem>>, vector<16x128xf32>
    %c0_2 = arith.constant 0 : index
    %c0_3 = arith.constant 0 : index
    %4 = vector.load %arg3[%c0_2, %c0_3] : memref<16x128xbf16, #tpu.memory_space<vmem>>, vector<16x128xbf16>
    %c0_4 = arith.constant 0 : index
    %c0_5 = arith.constant 0 : index
    %5 = vector.load %arg4[%c0_4, %c0_5] : memref<128x128xbf16, #tpu.memory_space<vmem>>, vector<128x128xbf16>
    %cst = arith.constant dense<0.000000e+00> : vector<16x128xf32>
    %6 = tpu.matmul %4, %5, %cst {dimension_numbers = #tpu.dot_dimension_numbers<[1], [0], [0], [1], [0, 0, 1, 1], [], []>} : vector<16x128xbf16>, vector<128x128xbf16>, vector<16x128xf32> -> vector<16x128xf32>
    %7 = arith.addf %3, %6 : vector<16x128xf32>
    %c0_6 = arith.constant 0 : index
    %c0_7 = arith.constant 0 : index
    %8 = vector.load %arg6[%c0_6, %c0_7] : memref<16x128xf32, #tpu.memory_space<vmem>>, vector<16x128xf32>
    tpu.vector_store %arg6[%c0_6, %c0_7], %7 {strides = array<i32>} : memref<16x128xf32, #tpu.memory_space<vmem>>, vector<16x128xf32>,
    %c0_i32_8 = arith.constant 0 : i32
    %9 = arith.cmpi eq, %arg2, %c0_i32_8 : i32
    %10 = arith.extui %9 : i1 to i32
    %c0_i32_9 = arith.constant 0 : i32
    %11 = arith.cmpi ne, %10, %c0_i32_9 : i32
    scf.if %11 {
      %c0_10 = arith.constant 0 : index
      %c0_11 = arith.constant 0 : index
      %12 = vector.load %arg6[%c0_10, %c0_11] : memref<16x128xf32, #tpu.memory_space<vmem>>, vector<16x128xf32>
      %c0_12 = arith.constant 0 : index
      %c0_13 = arith.constant 0 : index
      %13 = vector.load %arg5[%c0_12, %c0_13] : memref<16x1xf32, #tpu.memory_space<vmem>>, vector<16x1xf32>
      %14 = vector.broadcast %13 : vector<16x1xf32> to vector<16x128xf32>
      %15 = arith.mulf %12, %14 : vector<16x128xf32>
      %c0_14 = arith.constant 0 : index
      %c0_15 = arith.constant 0 : index
      %16 = vector.load %arg6[%c0_14, %c0_15] : memref<16x128xf32, #tpu.memory_space<vmem>>, vector<16x128xf32>
      tpu.vector_store %arg6[%c0_14, %c0_15], %15 {strides = array<i32>} : memref<16x128xf32, #tpu.memory_space<vmem>>, vector<16x128xf32>,
    } else {
    }
    return
  }
  func.func @transform_0(%arg0: i32, %arg1: i32, %arg2: i32) -> (i32, i32) {
    %c0_i32 = arith.constant 0 : i32
    return %arg0, %arg2 : i32, i32
  }
  func.func @transform_1(%arg0: i32, %arg1: i32, %arg2: i32) -> (i32, i32) {
    %c0_i32 = arith.constant 0 : i32
    return %arg2, %arg1 : i32, i32
  }
  func.func @transform_2(%arg0: i32, %arg1: i32, %arg2: i32) -> (i32, i32) {
    %c0_i32 = arith.constant 0 : i32
    %c0_i32_0 = arith.constant 0 : i32
    return %arg0, %c0_i32 : i32, i32
  }
  func.func @transform_3(%arg0: i32, %arg1: i32, %arg2: i32) -> (i32, i32) {
    %c0_i32 = arith.constant 0 : i32
    return %arg0, %arg1 : i32, i32
  }
}

</mosaic_0001>

<bundles_post_ra>
// kernel: tpu_custom_call.1
= control target key start
LH: loop header
LB: loop body
LE: loop exit
PB: predicated region body
PF: predicated region fallthrough
CT: control target
= control target key end

     0   :  { %8 = vsyncpa [#allocation3], 0  ;;  %s338_s0 = inlined_call_operand.vmem [shape: bf16[16,128], index: 0, kind: input, shape index: {}]   ;;  %s339_s1 = inlined_call_operand.hbm [shape: bf16[128,128], index: 1, kind: input, shape index: {}]   ;;  %s340_s2 = inlined_call_operand.vmem [shape: f32[16,1], index: 2, kind: input, shape index: {}]   ;;  %s341_s3 = inlined_call_operand.hbm [shape: f32[16,128], index: 3, kind: output, shape index: {}]  }
   0x1   :  { %9 = vsyncpa [#allocation4], 0  ;;  %s294_s12 = smov [#allocation2]  }
   0x2   :  { %s17_s13 = sshll.u32 %s294_s12, 4  ;;  %s18_s13 = int_to_ptr.vmem [resolvable:$true] %s17_s13 }
   0x3   :  { %s258_s14 = scalar_lea.vmem %s18_s13, 1024  ;;  %p263_p1 = scmp.lt.s32.totalorder %s18_s13, %s18_s13 }
   0x4   :  { %p259_p0 = scmp.ne.s32.totalorder %s18_s13, %s258_s14  ;;  %p264_p2 = scmp.lt.s32.totalorder %s258_s14, %s258_s14 }
   0x6   :  { %p265_p3 = por %p264_p2, %p263_p1 }
   0x8   :  { %p266_p4 = pnand %p265_p3, %p259_p0 }
   0xa   :  { %269 = shalt.err (!%p266_p4)
}
   0xb   :  { %s295_s15 = smov 64   ;;  %s296_s16 = smov 4  }
   0xc   :  { %23 = dma.hbm_to_vmem [thread:$0]  %s339_s1, 1024, %s18_s13, [#allocation3], %s295_s15, %s295_s15, %s296_s16  }
   0xd   :  { %290 = dma.done.wait [#allocation3], 1024  }
   0xe   :  { %291 = vsyncadd [#allocation3], 4294966272  ;;  %v297_v0 = vmov 0.0   ;;  %vm298_vm0 = vmmov 0   ;;  %v299_v1 = vmov 0   ;;  %v241_v2 = vld [vmem:[#allocation2 + $0x38] sm:$0xff]  }
   0xf   :  { %211 = vmatprep.subr.bf16.mxu0 %v297_v0  ;;  %227 = vmatprep.mubr.msk.bf16.mxu0 %vm298_vm0, %v297_v0  ;;  %v242_v3 = vld [vmem:[#allocation2 + $0x30] sm:$0xff]   ;;  %v243_v4 = vld [vmem:[#allocation2 + $0x28] sm:$0xff]   ;;  %v160_v5 = vld [vmem:[%s340_s2] sm:$0xff] }
  0x10   :  { %240 = vset.pattern.permute.xlu0 %v299_v1  ;;  %212 = vmatpush3.bf16.msra.mxu0 %v241_v2  ;;  %v244_v6 = vld [vmem:[#allocation2 + $0x20] sm:$0xff]   ;;  %v161_v7 = vld [vmem:[%s340_s2 + $0x8] sm:$0xff]  ;;  %v245_v8 = vld [vmem:[#allocation2 + $0x18] sm:$0xff]   ;;  %s300_s2 = smov [#allocation5]  }
  0x11   :  { %213 = vmatprep.subr.bf16.mxu0 %v297_v0  ;;  %164 = vperm.xlu0 %240, %v160_v5   ;;  %v246_v9 = vld [vmem:[#allocation2 + $0x10] sm:$0xff]   ;;  %v247_v10 = vld [vmem:[#allocation2 + $0x8] sm:$0xff]   ;;  %v248_v11 = vld [vmem:[#allocation2] sm:$0xff]   ;;  %s181_s24 = sshll.u32 %s300_s2, 4  ;;  %s182_s24 = int_to_ptr.vmem [resolvable:$true] %s181_s24 }
  0x12   :  { %v249_v12 = vld [vmem:[%s338_s0] sm:$0xff]   ;;  %s270_s25 = scalar_lea.vmem %s182_s24, 256  ;;  %p275_p6 = scmp.lt.s32.totalorder %s182_s24, %s182_s24 }
  0x13   :  { %p271_p5 = scmp.ne.s32.totalorder %s182_s24, %s270_s25  ;;  %p276_p7 = scmp.lt.s32.totalorder %s270_s25, %s270_s25 }
  0x14   :  { %214 = vmatpush3.bf16.msra.mxu0 %v242_v3 }
  0x15   :  { %215 = vmatprep.subr.bf16.mxu0 %v297_v0  ;;  %169 = vperm.xlu0 %240, %v161_v7   ;;  %p277_p8 = por %p276_p7, %p275_p6 }
  0x17   :  { %p278_p9 = pnand %p277_p8, %p271_p5 }
  0x18   :  { %216 = vmatpush3.bf16.msra.mxu0 %v243_v4 }
  0x19   :  { %217 = vmatprep.subr.bf16.mxu0 %v297_v0 }
  0x1c   :  { %218 = vmatpush3.bf16.msra.mxu0 %v244_v6 }
  0x1d   :  { %219 = vmatprep.subr.bf16.mxu0 %v297_v0 }
  0x20   :  { %220 = vmatpush3.bf16.msra.mxu0 %v245_v8 }
  0x21   :  { %221 = vmatprep.subr.bf16.mxu0 %v297_v0 }
  0x24   :  { %222 = vmatpush3.bf16.msra.mxu0 %v246_v9 }
  0x25   :  { %223 = vmatprep.subr.bf16.mxu0 %v297_v0 }
  0x28   :  { %224 = vmatpush3.bf16.msra.mxu0 %v247_v10 }
  0x29   :  { %225 = vmatprep.subr.bf16.mxu0 %v297_v0 }
  0x2c   :  { %226 = vmatpush3.bf16.msra.mxu0 %v248_v11 }
  0x2f   :  { %228 = vmatmul.mubr.bf16.vlgmr.msra.gmra.mxu0 %v249_v12 }
  0x8c   :  { %v165_v14 = vpop.permute.xlu0 %164 }
  0x90   :  { %v170_v19 = vpop.permute.xlu0 %169 }
  0xef   :  { %v144_v13 = vpop.f32.mrf.mxu0 }
  0xf0   :  { %v172_v16 = vmul.f32 %v165_v14, %v144_v13 }
  0xf1   :  { %v229_v15 = vpop.f32.mrf.mxu0 }
  0xf2   :  { %174 = vst [vmem:[#allocation5] sm:$0xff] %v172_v16 }
  0xf3   :  { %v147_v17 = vpop.f32.mrf.mxu0 }
  0xf4   :  { %v173_v20 = vmul.f32 %v170_v19, %v147_v17 }
  0xf5   :  { %v230_v18 = vpop.f32.mrf.mxu0 }
  0xf6   :  { %175 = vst [vmem:[#allocation5 + $0x8] sm:$0xff] %v173_v20 }
  0xf7   :  { %281 = shalt.err (!%p278_p9)
}
  0xf8   :  { %s301_s0 = smov 128   ;;  %s302_s26 = smov 8  }
  0xf9   :  { %187 = dma.vmem_to_hbm [thread:$0]  %s182_s24, 256, %s341_s3, [#allocation4], %s301_s0, %s301_s0, %s302_s26  }
  0xfa   :  { %292 = dma.done.wait [#allocation4], 256  }
  0xfb   :  { %293 = vsyncadd [#allocation4], 4294967040 }
  0xfc   :  { %191 = vsyncpa [#allocation3], 1 }
  0xfd   :  { %192 = vsyncpa [#allocation4], 1 }

</bundles_post_ra>
